<compile_context>
chip_gen: v7x
topology: tpu7x:2x2x1
jax: 0.10.0
libtpu: 0.0.40
codegen_flags: <defaults>
</compile_context>

<pallas_src>
import functools

import jax
import jax.numpy as jnp
from jax import lax
from jax.experimental import pallas as pl
from jax.experimental.pallas import tpu as pltpu


def _round_up(x, m):
    return ((x + m - 1) // m) * m


def _cdiv(a, b):
    return (a + b - 1) // b


# ----------------------------- kernels ------------------------------------ #


def _plain_kernel(x_ref, w_ref, b_ref, o_ref, *, inv_h, eps):
    """One row per sublane-row; lane dim == hidden (H >= 128 or odd H)."""
    x = x_ref[...].astype(jnp.float32)                       # (tm, H)
    e_x = jnp.sum(x, axis=-1, keepdims=True) * inv_h
    var = jnp.sum(x * x, axis=-1, keepdims=True) * inv_h - e_x * e_x
    inv_std = lax.rsqrt(var + eps)                            # EUP
    y = (x - e_x) * inv_std
    w = w_ref[...].astype(jnp.float32)                        # (1, H)
    b = b_ref[...].astype(jnp.float32)                        # (1, H)
    o_ref[...] = (b + w * y).astype(o_ref.dtype)


def _packed_kernel(x_ref, w_ref, b_ref, m_ref, o_ref, *, inv_h, eps):
    """p = 128 // H original rows packed into each 128-lane row.

    Segmented (per original row) lane reductions are done with a constant
    block-diagonal (128,128) matmul on the MXU.  The f32 operand is split into
    three exactly-representable bf16 terms so the result keeps full f32
    accuracy no matter how the hardware matmul treats its inputs.
    """
    x = x_ref[...].astype(jnp.float32)                        # (tm, 128)
    m = m_ref[...]                                            # (128, 128) bf16 0/1

    def seg_sum(v):
        h1 = v.astype(jnp.bfloat16)
        r1 = v - h1.astype(jnp.float32)
        h2 = r1.astype(jnp.bfloat16)
        r2 = r1 - h2.astype(jnp.float32)
        h3 = r2.astype(jnp.bfloat16)
        return (jnp.dot(h1, m, preferred_element_type=jnp.float32)
                + jnp.dot(h2, m, preferred_element_type=jnp.float32)
                + jnp.dot(h3, m, preferred_element_type=jnp.float32))

    e_x = seg_sum(x) * inv_h                                  # per-segment mean
    var = seg_sum(x * x) * inv_h - e_x * e_x
    inv_std = lax.rsqrt(var + eps)                            # EUP
    y = (x - e_x) * inv_std
    w = w_ref[...].astype(jnp.float32)                        # (1, 128) = weight tiled p times
    b = b_ref[...].astype(jnp.float32)
    o_ref[...] = (b + w * y).astype(o_ref.dtype)


# ----------------------------- wrapper ------------------------------------ #


def layernorm_2p5d_forward(x, weight, bias, eps=1e-5, *, vmem_limit_bytes=None):
    """x: (..., H); weight, bias: (H,). Returns same shape/dtype as x."""
    orig_shape = x.shape
    H = orig_shape[-1]
    rows = 1
    for d in orig_shape[:-1]:
        rows *= d

    itemsize = jnp.dtype(x.dtype).itemsize
    sublane = max(8, 32 // itemsize)          # f32 -> 8, bf16 -> 16, int8/fp8 -> 32

    # VMEM budget per generation (v7x has only 64 MiB physical per TC).
    if vmem_limit_bytes is None:
        try:
            phys = int(pltpu.get_tpu_info().vmem_capacity_bytes)
        except Exception:
            phys = 64 * 1024 * 1024           # conservative fallback
        vmem_limit_bytes = min(96 * 1024 * 1024, (phys * 3) // 4)
    vmem_limit_bytes = int(vmem_limit_bytes)

    # Lane-dense packing for narrow hidden sizes.
    pack = (H < 128) and (128 % H == 0) and (rows % (128 // H) == 0)
    if pack:
        p = 128 // H
        width = 128
        rows_k = rows // p
        x2 = x.reshape(rows_k, width)                       # free (contiguous) reshape
        w2 = jnp.tile(weight.reshape(-1), p).reshape(1, width)
        b2 = jnp.tile(bias.reshape(-1), p).reshape(1, width)
        seg_ids = jnp.arange(width, dtype=jnp.int32) // H
        m_blockdiag = (seg_ids[:, None] == seg_ids[None, :]).astype(jnp.bfloat16)
    else:
        width = H
        rows_k = rows
        x2 = x.reshape(rows_k, width)
        w2 = weight.reshape(1, width)
        b2 = bias.reshape(1, width)

    # Row-tile size from the VMEM budget: double-buffered in/out tiles plus
    # generous headroom (~10 f32 temps / element) for kernel temporaries.
    bytes_per_row = width * (4 * itemsize + 10 * 4)
    budget = (vmem_limit_bytes * 3) // 4
    tm = (budget // bytes_per_row) // sublane * sublane
    tm = max(sublane, min(tm, 4096))
    if rows_k > 2 * sublane:
        # keep >= 2 grid steps so v7x can shard the row axis across both TCs
        tm = min(tm, _round_up(_cdiv(rows_k, 2), sublane))
    if tm >= rows_k:
        tm = rows_k                       # single full-extent block (always legal)
    grid = (_cdiv(rows_k, tm),)           # tail block (if any) is padded/masked

    inv_h = 1.0 / float(H)
    mxu_flops = 6 * 2 * rows_k * width * width if pack else 0
    cost = pl.CostEstimate(
        flops=int(10 * rows * H + mxu_flops),
        transcendentals=int(rows),
        bytes_accessed=int(2 * rows * H * itemsize + 2 * H * itemsize),
    )
    cparams = pltpu.CompilerParams(
        dimension_semantics=("parallel",),
        vmem_limit_bytes=vmem_limit_bytes,
    )

    if pack:
        kernel = functools.partial(_packed_kernel, inv_h=inv_h, eps=eps)
        in_specs = [
            pl.BlockSpec((tm, width), lambda i: (i, 0)),
            pl.BlockSpec((1, width), lambda i: (0, 0)),
            pl.BlockSpec((1, width), lambda i: (0, 0)),
            pl.BlockSpec((width, width), lambda i: (0, 0)),
        ]
        args = (x2, w2, b2, m_blockdiag)
    else:
        kernel = functools.partial(_plain_kernel, inv_h=inv_h, eps=eps)
        in_specs = [
            pl.BlockSpec((tm, width), lambda i: (i, 0)),
            pl.BlockSpec((1, width), lambda i: (0, 0)),
            pl.BlockSpec((1, width), lambda i: (0, 0)),
        ]
        args = (x2, w2, b2)

    out = pl.pallas_call(
        kernel,
        out_shape=jax.ShapeDtypeStruct((rows_k, width), x.dtype),
        grid_spec=pltpu.PrefetchScalarGridSpec(
            num_scalar_prefetch=0,
            grid=grid,
            in_specs=in_specs,
            out_specs=pl.BlockSpec((tm, width), lambda i: (i, 0)),
        ),
        compiler_params=cparams,
        cost_estimate=cost,
    )(*args)
    return out.reshape(orig_shape)


# ------------------------------- demo -------------------------------------- #


if __name__ == "__main__":
    def ref_ln(x, w, b, eps):
        e = jnp.mean(x, axis=-1, keepdims=True)
        v = jnp.mean(x * x, axis=-1, keepdims=True) - e * e
        return b + w * ((x - e) / jnp.sqrt(v + eps))

    # Module params: normalized_shape = hidden = 32, eps = 1e-5
    normalized_shape = 32
    eps = 1e-5
    weight = jnp.ones((normalized_shape,), dtype=jnp.float32)   # module init
    bias = jnp.zeros((normalized_shape,), dtype=jnp.float32)    # module init

    key = jax.random.PRNGKey(0)
    x = jax.random.normal(key, (2, 8, normalized_shape), dtype=jnp.float32)

    out = jax.block_until_ready(layernorm_2p5d_forward(x, weight, bias, eps=eps))
    assert out.shape == x.shape and out.dtype == x.dtype
    assert jnp.allclose(out, ref_ln(x, weight, bias, eps), atol=2e-5, rtol=2e-5)

    # Extra robustness checks:
    # 1) packed (H<128) path with a padded tail block and non-trivial scale/bias
    k1, k2, k3, k4 = jax.random.split(key, 4)
    x2 = jax.random.normal(k1, (2, 250, 64), dtype=jnp.float32)
    w2 = jax.random.normal(k2, (64,), dtype=jnp.float32)
    b2 = jax.random.normal(k3, (64,), dtype=jnp.float32)
    o2 = jax.block_until_ready(layernorm_2p5d_forward(x2, w2, b2, eps=eps))
    assert jnp.allclose(o2, ref_ln(x2, w2, b2, eps), atol=2e-5, rtol=2e-5)

    # 2) plain (H>=128) path, row count not divisible by the tile -> padded tail
    x3 = jax.random.normal(k4, (3, 333, 256), dtype=jnp.float32)
    w3 = jnp.ones((256,), dtype=jnp.float32)
    b3 = jnp.zeros((256,), dtype=jnp.float32)
    o3 = jax.block_until_ready(layernorm_2p5d_forward(x3, w3, b3, eps=eps))
    assert jnp.allclose(o3, ref_ln(x3, w3, b3, eps), atol=2e-5, rtol=2e-5)

    print("KERNEL_OK")
</pallas_src>

<mosaic_0001>
module attributes {stable_mosaic.version = 11 : i64} {
  func.func @_packed_kernel(%arg0: i32, %arg1: memref<4x128xf32, #tpu.memory_space<vmem>>, %arg2: memref<1x128xf32, #tpu.memory_space<vmem>>, %arg3: memref<1x128xf32, #tpu.memory_space<vmem>>, %arg4: memref<128x128xbf16, #tpu.memory_space<vmem>>, %arg5: memref<4x128xf32, #tpu.memory_space<vmem>>) attributes {dimension_semantics = [#tpu.dimension_semantics<parallel>], iteration_bounds = array<i64: 1>, scalar_prefetch = 0 : i64, scratch_operands = 0 : i64, tpu.core_type = #tpu.core_type<tc>, window_params = [{transform_indices = @transform_0, window_bounds = array<i64: 4, 128>}, {pipeline_mode = #tpu.pipeline_mode<synchronous>, transform_indices = @transform_1, window_bounds = array<i64: 1, 128>}, {pipeline_mode = #tpu.pipeline_mode<synchronous>, transform_indices = @transform_2, window_bounds = array<i64: 1, 128>}, {pipeline_mode = #tpu.pipeline_mode<synchronous>, transform_indices = @transform_3, window_bounds = array<i64: 128, 128>}, {transform_indices = @transform_4, window_bounds = array<i64: 4, 128>}]} {
    %c0 = arith.constant 0 : index
    %c0_0 = arith.constant 0 : index
    %0 = vector.load %arg1[%c0, %c0_0] : memref<4x128xf32, #tpu.memory_space<vmem>>, vector<4x128xf32>
    %c0_1 = arith.constant 0 : index
    %c0_2 = arith.constant 0 : index
    %1 = vector.load %arg4[%c0_1, %c0_2] : memref<128x128xbf16, #tpu.memory_space<vmem>>, vector<128x128xbf16>
    %2 = arith.truncf %0 : vector<4x128xf32> to vector<4x128xbf16>
    %3 = arith.extf %2 : vector<4x128xbf16> to vector<4x128xf32>
    %4 = arith.subf %0, %3 : vector<4x128xf32>
    %5 = arith.truncf %4 : vector<4x128xf32> to vector<4x128xbf16>
    %6 = arith.extf %5 : vector<4x128xbf16> to vector<4x128xf32>
    %7 = arith.subf %4, %6 : vector<4x128xf32>
    %8 = arith.truncf %7 : vector<4x128xf32> to vector<4x128xbf16>
    %cst = arith.constant dense<0.000000e+00> : vector<4x128xf32>
    %9 = tpu.matmul %2, %1, %cst {dimension_numbers = #tpu.dot_dimension_numbers<[1], [0], [0], [1], [0, 0, 1, 1], [], []>} : vector<4x128xbf16>, vector<128x128xbf16>, vector<4x128xf32> -> vector<4x128xf32>
    %cst_3 = arith.constant dense<0.000000e+00> : vector<4x128xf32>
    %10 = tpu.matmul %5, %1, %cst_3 {dimension_numbers = #tpu.dot_dimension_numbers<[1], [0], [0], [1], [0, 0, 1, 1], [], []>} : vector<4x128xbf16>, vector<128x128xbf16>, vector<4x128xf32> -> vector<4x128xf32>
    %11 = arith.addf %9, %10 : vector<4x128xf32>
    %cst_4 = arith.constant dense<0.000000e+00> : vector<4x128xf32>
    %12 = tpu.matmul %8, %1, %cst_4 {dimension_numbers = #tpu.dot_dimension_numbers<[1], [0], [0], [1], [0, 0, 1, 1], [], []>} : vector<4x128xbf16>, vector<128x128xbf16>, vector<4x128xf32> -> vector<4x128xf32>
    %13 = arith.addf %11, %12 : vector<4x128xf32>
    %cst_5 = arith.constant 3.125000e-02 : f32
    %14 = vector.broadcast %cst_5 : f32 to vector<4x128xf32>
    %15 = arith.mulf %13, %14 : vector<4x128xf32>
    %16 = arith.mulf %0, %0 : vector<4x128xf32>
    %17 = arith.truncf %16 : vector<4x128xf32> to vector<4x128xbf16>
    %18 = arith.extf %17 : vector<4x128xbf16> to vector<4x128xf32>
    %19 = arith.subf %16, %18 : vector<4x128xf32>
    %20 = arith.truncf %19 : vector<4x128xf32> to vector<4x128xbf16>
    %21 = arith.extf %20 : vector<4x128xbf16> to vector<4x128xf32>
    %22 = arith.subf %19, %21 : vector<4x128xf32>
    %23 = arith.truncf %22 : vector<4x128xf32> to vector<4x128xbf16>
    %cst_6 = arith.constant dense<0.000000e+00> : vector<4x128xf32>
    %24 = tpu.matmul %17, %1, %cst_6 {dimension_numbers = #tpu.dot_dimension_numbers<[1], [0], [0], [1], [0, 0, 1, 1], [], []>} : vector<4x128xbf16>, vector<128x128xbf16>, vector<4x128xf32> -> vector<4x128xf32>
    %cst_7 = arith.constant dense<0.000000e+00> : vector<4x128xf32>
    %25 = tpu.matmul %20, %1, %cst_7 {dimension_numbers = #tpu.dot_dimension_numbers<[1], [0], [0], [1], [0, 0, 1, 1], [], []>} : vector<4x128xbf16>, vector<128x128xbf16>, vector<4x128xf32> -> vector<4x128xf32>
    %26 = arith.addf %24, %25 : vector<4x128xf32>
    %cst_8 = arith.constant dense<0.000000e+00> : vector<4x128xf32>
    %27 = tpu.matmul %23, %1, %cst_8 {dimension_numbers = #tpu.dot_dimension_numbers<[1], [0], [0], [1], [0, 0, 1, 1], [], []>} : vector<4x128xbf16>, vector<128x128xbf16>, vector<4x128xf32> -> vector<4x128xf32>
    %28 = arith.addf %26, %27 : vector<4x128xf32>
    %cst_9 = arith.constant 3.125000e-02 : f32
    %29 = vector.broadcast %cst_9 : f32 to vector<4x128xf32>
    %30 = arith.mulf %28, %29 : vector<4x128xf32>
    %31 = arith.mulf %15, %15 : vector<4x128xf32>
    %32 = arith.subf %30, %31 : vector<4x128xf32>
    %cst_10 = arith.constant 9.99999974E-6 : f32
    %33 = vector.broadcast %cst_10 : f32 to vector<4x128xf32>
    %34 = arith.addf %32, %33 : vector<4x128xf32>
    %35 = math.rsqrt %34 : vector<4x128xf32>
    %36 = arith.subf %0, %15 : vector<4x128xf32>
    %37 = arith.mulf %36, %35 : vector<4x128xf32>
    %c0_11 = arith.constant 0 : index
    %c0_12 = arith.constant 0 : index
    %38 = vector.load %arg2[%c0_11, %c0_12] : memref<1x128xf32, #tpu.memory_space<vmem>>, vector<1x128xf32>
    %c0_13 = arith.constant 0 : index
    %c0_14 = arith.constant 0 : index
    %39 = vector.load %arg3[%c0_13, %c0_14] : memref<1x128xf32, #tpu.memory_space<vmem>>, vector<1x128xf32>
    %40 = vector.broadcast %38 : vector<1x128xf32> to vector<4x128xf32>
    %41 = arith.mulf %40, %37 : vector<4x128xf32>
    %42 = vector.broadcast %39 : vector<1x128xf32> to vector<4x128xf32>
    %43 = arith.addf %42, %41 : vector<4x128xf32>
    %c0_15 = arith.constant 0 : index
    %c0_16 = arith.constant 0 : index
    %44 = vector.load %arg5[%c0_15, %c0_16] : memref<4x128xf32, #tpu.memory_space<vmem>>, vector<4x128xf32>
    tpu.vector_store %arg5[%c0_15, %c0_16], %43 {strides = array<i32>} : memref<4x128xf32, #tpu.memory_space<vmem>>, vector<4x128xf32>,
    return
  }
  func.func @transform_0(%arg0: i32) -> (i32, i32) {
    %c0_i32 = arith.constant 0 : i32
    %c0_i32_0 = arith.constant 0 : i32
    return %arg0, %c0_i32 : i32, i32
  }
  func.func @transform_1(%arg0: i32) -> (i32, i32) {
    %c0_i32 = arith.constant 0 : i32
    %c0_i32_0 = arith.constant 0 : i32
    %c0_i32_1 = arith.constant 0 : i32
    return %c0_i32, %c0_i32_0 : i32, i32
  }
  func.func @transform_2(%arg0: i32) -> (i32, i32) {
    %c0_i32 = arith.constant 0 : i32
    %c0_i32_0 = arith.constant 0 : i32
    %c0_i32_1 = arith.constant 0 : i32
    return %c0_i32, %c0_i32_0 : i32, i32
  }
  func.func @transform_3(%arg0: i32) -> (i32, i32) {
    %c0_i32 = arith.constant 0 : i32
    %c0_i32_0 = arith.constant 0 : i32
    %c0_i32_1 = arith.constant 0 : i32
    return %c0_i32, %c0_i32_0 : i32, i32
  }
  func.func @transform_4(%arg0: i32) -> (i32, i32) {
    %c0_i32 = arith.constant 0 : i32
    %c0_i32_0 = arith.constant 0 : i32
    return %arg0, %c0_i32 : i32, i32
  }
}

</mosaic_0001>

<bundles_post_ra>
// kernel: tpu_custom_call.1
= control target key start
LH: loop header
LB: loop body
LE: loop exit
PB: predicated region body
PF: predicated region fallthrough
CT: control target
= control target key end

     0   :  { %9 = vsyncpa [#allocation3], 0  ;;  %s928_s0 = inlined_call_operand.hbm [shape: f32[4,128], index: 0, kind: input, shape index: {}]   ;;  %s929_s1 = inlined_call_operand.vmem [shape: f32[1,128], index: 1, kind: input, shape index: {}]   ;;  %s930_s2 = inlined_call_operand.vmem [shape: f32[1,128], index: 2, kind: input, shape index: {}]   ;;  %s931_s3 = inlined_call_operand.hbm [shape: bf16[128,128], index: 3, kind: input, shape index: {}]   ;;  %s932_s4 = inlined_call_operand.hbm [shape: f32[4,128], index: 4, kind: output, shape index: {}]  }
   0x1   :  { %10 = vsyncpa [#allocation6], 0 }
   0x2   :  { %11 = vsyncpa [#allocation4], 0  ;;  %s697_s15 = smov [#allocation2]   ;;  %s698_s17 = smov [#allocation5]  }
   0x3   :  { %s18_s16 = sshll.u32 %s697_s15, 4  ;;  %s31_s18 = sshll.u32 %s698_s17, 4  ;;  %s19_s16 = int_to_ptr.vmem [resolvable:$true] %s18_s16  ;;  %s729_s18 = int_to_ptr.vmem [resolvable:$true] %s31_s18 }
   0x4   :  { %s625_s21 = scalar_lea.hbm %s928_s0, 64 }
   0x5   :  { %p626_p0 = scmp.ne.s32.totalorder %s928_s0, %s625_s21  ;;  %p629_p1 = scmp.lt.u32.totalorder %s625_s21, %s928_s0 }
   0x7   :  { %p631_p2 = pnand %p629_p1, %p626_p0 }
   0x9   :  { %634 = shalt.err (!%p631_p2)
}
   0xa   :  { %s635_s26 = scalar_lea.vmem %s19_s16, 64  ;;  %p640_p4 = scmp.lt.s32.totalorder %s19_s16, %s19_s16 }
   0xb   :  { %p636_p3 = scmp.ne.s32.totalorder %s19_s16, %s635_s26  ;;  %p641_p5 = scmp.lt.s32.totalorder %s635_s26, %s635_s26 }
   0xd   :  { %p642_p6 = por %p641_p5, %p640_p4 }
   0xf   :  { %p643_p7 = pnand %p642_p6, %p636_p3 }
  0x11   :  { %646 = shalt.err (!%p643_p7)
}
  0x12   :  { %21 = dma.hbm_to_vmem [thread:$0]  %s928_s0, 64, %s19_s16, [#allocation3]  }
  0x13   :  { %s647_s5 = scalar_lea.hbm %s931_s3, 1024 }
  0x14   :  { %p648_p8 = scmp.ne.s32.totalorder %s931_s3, %s647_s5  ;;  %p651_p9 = scmp.lt.u32.totalorder %s647_s5, %s931_s3 }
  0x16   :  { %p653_p10 = pnand %p651_p9, %p648_p8 }
  0x18   :  { %656 = shalt.err (!%p653_p10)
}
  0x19   :  { %s657_s10 = scalar_lea.vmem %s729_s18, 1024  ;;  %p662_p12 = scmp.lt.s32.totalorder %s729_s18, %s729_s18 }
  0x1a   :  { %p658_p11 = scmp.ne.s32.totalorder %s729_s18, %s657_s10  ;;  %p663_p13 = scmp.lt.s32.totalorder %s657_s10, %s657_s10 }
  0x1c   :  { %p664_p0 = por %p663_p13, %p662_p12 }
  0x1e   :  { %p665_p1 = pnand %p664_p0, %p658_p11 }
  0x20   :  { %668 = shalt.err (!%p665_p1)
}
  0x21   :  { %s699_s0 = smov 64   ;;  %s700_s11 = smov 4  }
  0x22   :  { %37 = dma.hbm_to_vmem [thread:$0]  %s931_s3, 1024, %s729_s18, [#allocation6], %s699_s0, %s699_s0, %s700_s11  }
  0x23   :  { %691 = dma.done.wait [#allocation3], 64  }
  0x24   :  { %692 = vsyncadd [#allocation3], 4294967232 }
  0x25   :  { %693 = dma.done.wait [#allocation6], 1024  }
  0x26   :  { %694 = vsyncadd [#allocation6], 4294966272  ;;  %v701_v0 = vmov 0.0   ;;  %vm702_vm0 = vmmov 0   ;;  %v766_v1 = vld [vmem:[#allocation5] sm:$0xff]   ;;  %v770_v2 = vld [vmem:[#allocation5 + $0x8] sm:$0xff]  }
  0x27   :  { %472 = vmatprep.subr.bf16.mxu0 %v701_v0  ;;  %532 = vmatprep.subr.bf16.mxu1 %v701_v0  ;;  %v776_v3 = vld [vmem:[#allocation5 + $0x10] sm:$0xff]   ;;  %v782_v4 = vld [vmem:[#allocation5 + $0x18] sm:$0xff]   ;;  %v792_v7 = vld [vmem:[#allocation5 + $0x20] sm:$0xff]   ;;  %s703_s17 = smov [#allocation7]  }
  0x28   :  { %488 = vmatprep.mubr.msk.bf16.mxu0 %vm702_vm0, %v701_v0  ;;  %548 = vmatprep.mubr.msk.bf16.mxu1 %vm702_vm0, %v701_v0  ;;  %v784_v5 = vld [vmem:[#allocation2] sm:$0xf]  ;;  %v800_v10 = vld [vmem:[#allocation5 + $0x28] sm:$0xff]   ;;  %v806_v13 = vld [vmem:[#allocation5 + $0x30] sm:$0xff]   ;;  %s398_s18 = sshll.u32 %s703_s17, 4  ;;  %s399_s18 = int_to_ptr.vmem [resolvable:$true] %s398_s18 }
  0x29   :  { %473 = vmatpush3.bf16.msra.mxu0 %v766_v1  ;;  %533 = vmatpush3.bf16.msra.mxu1 %v766_v1  ;;  %v239_v6 = vmul.f32 %v784_v5, %v784_v5  ;;  %v62_v8 = vpack.c.bf16 %v784_v5, %v784_v5  ;;  %v817_v16 = vld [vmem:[#allocation5 + $0x38] sm:$0xff]   ;;  %s669_s19 = scalar_lea.vmem %s399_s18, 64  ;;  %p674_p3 = scmp.lt.s32.totalorder %s399_s18, %s399_s18 }
  0x2a   :  { %474 = vmatprep.subr.bf16.mxu0 %v701_v0  ;;  %534 = vmatprep.subr.bf16.mxu1 %v701_v0  ;;  %v416_v40 = vld [vmem:[%s929_s1] ss:$0 sm:$0xff]  ;;  %p670_p2 = scmp.ne.s32.totalorder %s399_s18, %s669_s19  ;;  %p675_p4 = scmp.lt.s32.totalorder %s669_s19, %s669_s19 }
  0x2b   :  { %v240_v9 = vpack.c.bf16 %v239_v6, %v239_v6  ;;  %v63_v11 = vunpack.c.l.bf16 %v62_v8  ;;  %v417_v42 = vld [vmem:[%s930_s2] ss:$0 sm:$0xff] }
  0x2c   :  { %p676_p5 = por %p675_p4, %p674_p3 }
  0x2d   :  { %475 = vmatpush3.bf16.msra.mxu0 %v770_v2  ;;  %535 = vmatpush3.bf16.msra.mxu1 %v770_v2  ;;  %v241_v12 = vunpack.c.l.bf16 %v240_v9  ;;  %v811_v14 = vsub.f32 %v784_v5, %v63_v11 }
  0x2e   :  { %476 = vmatprep.subr.bf16.mxu0 %v701_v0  ;;  %536 = vmatprep.subr.bf16.mxu1 %v701_v0  ;;  %p677_p6 = pnand %p676_p5, %p670_p2 }
  0x2f   :  { %v813_v15 = vsub.f32 %v239_v6, %v241_v12  ;;  %v823_v17 = vpack.c.bf16 %v811_v14, %v811_v14 }
  0x31   :  { %477 = vmatpush3.bf16.msra.mxu0 %v776_v3  ;;  %537 = vmatpush3.bf16.msra.mxu1 %v776_v3  ;;  %v827_v18 = vpack.c.bf16 %v813_v15, %v813_v15  ;;  %v66_v19 = vunpack.c.l.bf16 %v823_v17 }
  0x32   :  { %478 = vmatprep.subr.bf16.mxu0 %v701_v0  ;;  %538 = vmatprep.subr.bf16.mxu1 %v701_v0 }
  0x33   :  { %v244_v20 = vunpack.c.l.bf16 %v827_v18  ;;  %v67_v21 = vsub.f32 %v811_v14, %v66_v19 }
  0x35   :  { %479 = vmatpush3.bf16.msra.mxu0 %v782_v4  ;;  %539 = vmatpush3.bf16.msra.mxu1 %v782_v4  ;;  %v245_v22 = vsub.f32 %v813_v15, %v244_v20  ;;  %v68_v23 = vpack.c.bf16 %v67_v21, %v67_v21 }
  0x36   :  { %480 = vmatprep.subr.bf16.mxu0 %v701_v0  ;;  %540 = vmatprep.subr.bf16.mxu1 %v701_v0 }
  0x37   :  { %v246_v24 = vpack.c.bf16 %v245_v22, %v245_v22 }
  0x39   :  { %481 = vmatpush3.bf16.msra.mxu0 %v792_v7  ;;  %541 = vmatpush3.bf16.msra.mxu1 %v792_v7 }
  0x3a   :  { %482 = vmatprep.subr.bf16.mxu0 %v701_v0  ;;  %542 = vmatprep.subr.bf16.mxu1 %v701_v0 }
  0x3d   :  { %483 = vmatpush3.bf16.msra.mxu0 %v800_v10  ;;  %543 = vmatpush3.bf16.msra.mxu1 %v800_v10 }
  0x3e   :  { %484 = vmatprep.subr.bf16.mxu0 %v701_v0  ;;  %544 = vmatprep.subr.bf16.mxu1 %v701_v0 }
  0x41   :  { %485 = vmatpush3.bf16.msra.mxu0 %v806_v13  ;;  %545 = vmatpush3.bf16.msra.mxu1 %v806_v13 }
  0x42   :  { %486 = vmatprep.subr.bf16.mxu0 %v701_v0  ;;  %546 = vmatprep.subr.bf16.mxu1 %v701_v0 }
  0x45   :  { %487 = vmatpush3.bf16.msra.mxu0 %v817_v16  ;;  %547 = vmatpush3.bf16.msra.mxu1 %v817_v16 }
  0x46   :  { %492 = vmatprep.subr.bf16.mxu0 %v701_v0  ;;  %552 = vmatprep.subr.bf16.mxu1 %v701_v0 }
  0x48   :  { %489 = vmatmul.mubr.bf16.vlgmr.msra.gmra.mrb[0].mxu0 %v823_v17  ;;  %549 = vmatmul.mubr.bf16.vlgmr.msra.gmra.mrb[0].mxu1 %v827_v18 }
  0x49   :  { %493 = vmatpush3.bf16.msra.mxu0 %v766_v1  ;;  %553 = vmatpush3.bf16.msra.mxu1 %v766_v1 }
  0x4a   :  { %494 = vmatprep.subr.bf16.mxu0 %v701_v0  ;;  %554 = vmatprep.subr.bf16.mxu1 %v701_v0 }
  0x4b   :  { %508 = vmatprep.mubr.msk.bf16.mxu0 %vm702_vm0, %v701_v0  ;;  %568 = vmatprep.mubr.msk.bf16.mxu1 %vm702_vm0, %v701_v0 }
  0x4d   :  { %495 = vmatpush3.bf16.msra.mxu0 %v770_v2  ;;  %555 = vmatpush3.bf16.msra.mxu1 %v770_v2 }
  0x4e   :  { %496 = vmatprep.subr.bf16.mxu0 %v701_v0  ;;  %556 = vmatprep.subr.bf16.mxu1 %v701_v0 }
  0x51   :  { %497 = vmatpush3.bf16.msra.mxu0 %v776_v3  ;;  %557 = vmatpush3.bf16.msra.mxu1 %v776_v3 }
  0x52   :  { %498 = vmatprep.subr.bf16.mxu0 %v701_v0  ;;  %558 = vmatprep.subr.bf16.mxu1 %v701_v0 }
  0x55   :  { %499 = vmatpush3.bf16.msra.mxu0 %v782_v4  ;;  %559 = vmatpush3.bf16.msra.mxu1 %v782_v4 }
  0x56   :  { %500 = vmatprep.subr.bf16.mxu0 %v701_v0  ;;  %560 = vmatprep.subr.bf16.mxu1 %v701_v0 }
  0x59   :  { %501 = vmatpush3.bf16.msra.mxu0 %v792_v7  ;;  %561 = vmatpush3.bf16.msra.mxu1 %v792_v7 }
  0x5a   :  { %502 = vmatprep.subr.bf16.mxu0 %v701_v0  ;;  %562 = vmatprep.subr.bf16.mxu1 %v701_v0 }
  0x5d   :  { %503 = vmatpush3.bf16.msra.mxu0 %v800_v10  ;;  %563 = vmatpush3.bf16.msra.mxu1 %v800_v10 }
  0x5e   :  { %504 = vmatprep.subr.bf16.mxu0 %v701_v0  ;;  %564 = vmatprep.subr.bf16.mxu1 %v701_v0 }
  0x61   :  { %505 = vmatpush3.bf16.msra.mxu0 %v806_v13  ;;  %565 = vmatpush3.bf16.msra.mxu1 %v806_v13 }
  0x62   :  { %506 = vmatprep.subr.bf16.mxu0 %v701_v0  ;;  %566 = vmatprep.subr.bf16.mxu1 %v701_v0 }
  0x65   :  { %507 = vmatpush3.bf16.msra.mxu0 %v817_v16  ;;  %567 = vmatpush3.bf16.msra.mxu1 %v817_v16 }
  0x66   :  { %512 = vmatprep.subr.bf16.mxu0 %v701_v0  ;;  %572 = vmatprep.subr.bf16.mxu1 %v701_v0 }
  0x68   :  { %509 = vmatmul.mubr.bf16.vlgmr.msra.gmra.mrb[0].mxu0 %v62_v8  ;;  %569 = vmatmul.mubr.bf16.vlgmr.msra.gmra.mrb[0].mxu1 %v240_v9 }
  0x69   :  { %513 = vmatpush3.bf16.msra.mxu0 %v766_v1  ;;  %573 = vmatpush3.bf16.msra.mxu1 %v766_v1 }
  0x6a   :  { %514 = vmatprep.subr.bf16.mxu0 %v701_v0  ;;  %574 = vmatprep.subr.bf16.mxu1 %v701_v0 }
  0x6b   :  { %528 = vmatprep.mubr.msk.bf16.mxu0 %vm702_vm0, %v701_v0  ;;  %588 = vmatprep.mubr.msk.bf16.mxu1 %vm702_vm0, %v701_v0 }
  0x6d   :  { %515 = vmatpush3.bf16.msra.mxu0 %v770_v2  ;;  %575 = vmatpush3.bf16.msra.mxu1 %v770_v2 }
  0x6e   :  { %516 = vmatprep.subr.bf16.mxu0 %v701_v0  ;;  %576 = vmatprep.subr.bf16.mxu1 %v701_v0 }
  0x71   :  { %517 = vmatpush3.bf16.msra.mxu0 %v776_v3  ;;  %577 = vmatpush3.bf16.msra.mxu1 %v776_v3 }
  0x72   :  { %518 = vmatprep.subr.bf16.mxu0 %v701_v0  ;;  %578 = vmatprep.subr.bf16.mxu1 %v701_v0 }
  0x75   :  { %519 = vmatpush3.bf16.msra.mxu0 %v782_v4  ;;  %579 = vmatpush3.bf16.msra.mxu1 %v782_v4 }
  0x76   :  { %520 = vmatprep.subr.bf16.mxu0 %v701_v0  ;;  %580 = vmatprep.subr.bf16.mxu1 %v701_v0 }
  0x79   :  { %521 = vmatpush3.bf16.msra.mxu0 %v792_v7  ;;  %581 = vmatpush3.bf16.msra.mxu1 %v792_v7 }
  0x7a   :  { %522 = vmatprep.subr.bf16.mxu0 %v701_v0  ;;  %582 = vmatprep.subr.bf16.mxu1 %v701_v0 }
  0x7d   :  { %523 = vmatpush3.bf16.msra.mxu0 %v800_v10  ;;  %583 = vmatpush3.bf16.msra.mxu1 %v800_v10 }
  0x7e   :  { %524 = vmatprep.subr.bf16.mxu0 %v701_v0  ;;  %584 = vmatprep.subr.bf16.mxu1 %v701_v0 }
  0x81   :  { %525 = vmatpush3.bf16.msra.mxu0 %v806_v13  ;;  %585 = vmatpush3.bf16.msra.mxu1 %v806_v13 }
  0x82   :  { %526 = vmatprep.subr.bf16.mxu0 %v701_v0  ;;  %586 = vmatprep.subr.bf16.mxu1 %v701_v0 }
  0x85   :  { %527 = vmatpush3.bf16.msra.mxu0 %v817_v16  ;;  %587 = vmatpush3.bf16.msra.mxu1 %v817_v16 }
  0x88   :  { %529 = vmatmul.mubr.bf16.vlgmr.msra.gmra.mrb[0].mxu0 %v68_v23  ;;  %589 = vmatmul.mubr.bf16.vlgmr.msra.gmra.mrb[0].mxu1 %v246_v24 }
 0x15b   :  { %v231_v25 = vpop.f32.mrb[0].mxu0  ;;  %v361_v26 = vpop.f32.mrb[0].mxu1 }
 0x15c   :  { %v238_v27 = vmul.f32 0.03125, %v231_v25  ;;  %v530_v28 = vpop.f32.mrb[1].mxu0  ;;  %v590_v29 = vpop.f32.mrb[1].mxu1  ;;  %v368_v33 = vmul.f32 0.03125, %v361_v26 }
 0x15d   :  { %v234_v30 = vpop.f32.mrb[2].mxu0  ;;  %v364_v31 = vpop.f32.mrb[2].mxu1 }
 0x15e   :  { %v369_v32 = vmul.f32 %v238_v27, %v238_v27  ;;  %v531_v34 = vpop.f32.mrb[3].mxu0  ;;  %v591_v35 = vpop.f32.mrb[3].mxu1  ;;  %v373_v38 = vsub.f32 %v784_v5, %v238_v27 }
 0x160   :  { %v370_v36 = vsub.f32 %v368_v33, %v369_v32 }
 0x162   :  { %v371_v37 = vadd.f32 1e-05, %v370_v36 }
 0x164   :  { %623 = vrsqrt.f32 %v371_v37 }
 0x16e   :  { %v624_v39 = vpop.eup %623 }
 0x16f   :  { %v374_v41 = vmul.f32 %v624_v39, %v373_v38 }
 0x171   :  { %v383_v43 = vmul.f32 %v416_v40, %v374_v41 }
 0x173   :  { %v390_v44 = vadd.f32 %v417_v42, %v383_v43 }
 0x175   :  { %391 = vst [vmem:[#allocation7] sm:$0xf] %v390_v44 }
 0x176   :  { %680 = shalt.err (!%p677_p6)
}
 0x177   :  { %s681_s21 = scalar_lea.hbm %s932_s4, 64 }
 0x178   :  { %p682_p7 = scmp.ne.s32.totalorder %s932_s4, %s681_s21  ;;  %p685_p8 = scmp.lt.u32.totalorder %s681_s21, %s932_s4 }
 0x17a   :  { %p687_p9 = pnand %p685_p8, %p682_p7 }
 0x17c   :  { %690 = shalt.err (!%p687_p9)
}
 0x17d   :  { %401 = dma.vmem_to_hbm [thread:$0]  %s399_s18, 64, %s932_s4, [#allocation4]  }
 0x17e   :  { %695 = dma.done.wait [#allocation4], 64  }
 0x17f   :  { %696 = vsyncadd [#allocation4], 4294967232 }
 0x180   :  { %405 = vsyncpa [#allocation3], 1 }
 0x181   :  { %406 = vsyncpa [#allocation6], 1 }
 0x182   :  { %407 = vsyncpa [#allocation4], 1 }

</bundles_post_ra>
